<compile_context>
chip_gen: v6e
topology: v6e:2x2x1
jax: 0.10.0
libtpu: 0.0.40
codegen_flags: <defaults>
</compile_context>

<pallas_src>
import numpy as np
import jax
import jax.numpy as jnp
from jax import lax
from jax.experimental import pallas as pl
from jax.experimental.pallas import tpu as pltpu

# ---------------- problem configuration (illness-death model) ----------------
TRANS = np.array([[np.nan, 1.0, 1.0],
                  [np.nan, np.nan, 1.0],
                  [np.nan, np.nan, np.nan]], dtype=np.float32)
D = TRANS.shape[0]                               # 3
NP_ = D * D                                      # num_probs = 9
NH = int(np.nansum(TRANS))                       # number_of_hazards = 3
NUM_LATENT = 4
LAYERS = [32, 32]
SOFTPLUS_BETA = 1.0
BATCH = 8
Y_DIM = 2 * NP_ + NH + NUM_LATENT                # 25
IN_DIM = 2 * NP_ + NH + 2 * NUM_LATENT + 1       # 30
OUT_MLP = NH + NUM_LATENT                        # 7
P2 = 2 * NP_                                     # 18
GH_COLS = 2 * D * NP_                            # 54

X_COLS = 32                                      # [y(25) | y0(4) | t | 1 | pad] -> 32
HID = LAYERS[0]                                  # 32

# row offsets inside the packed weight buffer (8-row-aligned blocks)
W1_ROW, W2_ROW, W3_ROW, B2_ROW, B3_ROW = 0, 32, 64, 96, 104
WPACK_ROWS = 112
# row offsets inside the packed constant buffer
GHBD_ROW, QBHG_ROW, RR_ROW = 0, 32, 64
CPACK_ROWS, CPACK_COLS = 128, 64

# q construction assumes no diagonal hazards (true for this illness-death TRANS).
assert not np.any(np.diag(TRANS) == 1.0), "diagonal hazards not supported"
assert IN_DIM + 1 <= X_COLS and HID == 32


# ---------------- static selection constants (built once, in numpy) -----------
def _build_cpack():
    # S[h, p] = 1 iff flat position p is the h-th (row-major) hazard slot.
    haz_pos = np.nonzero((TRANS == 1.0).reshape(-1))[0]
    S = np.zeros((NH, NP_), np.float32)
    S[np.arange(NH), haz_pos] = 1.0
    # RT[p, i] = 1 iff flat position p lies in row i (row-sum reducer).
    RT = np.zeros((NP_, D), np.float32)
    for i in range(D):
        RT[i * D:(i + 1) * D, i] = 1.0
    # DM[i, i*d+i] = 1 (places row-sums on the diagonal).
    DM = np.zeros((D, NP_), np.float32)
    for i in range(D):
        DM[i, i * D + i] = 1.0
    QB = S - S @ RT @ DM                                     # q_flat = qvec @ QB

    # G_j: (A_flat @ G_j)[b, i*d+k] = A[b, i, j];  H_j: ... = A[b, j, k]
    G = np.zeros((D, NP_, NP_), np.float32)
    H = np.zeros((D, NP_, NP_), np.float32)
    for j in range(D):
        for i in range(D):
            for k in range(D):
                G[j, i * D + j, i * D + k] = 1.0
                H[j, j * D + k, i * D + k] = 1.0
    Gcat = np.concatenate([G[j] for j in range(D)], axis=1)  # (9, 27)
    Hcat = np.concatenate([H[j] for j in range(D)], axis=1)  # (9, 27)

    # [P_flat | Pb_flat] @ GHbd = [P@G_0 P@G_1 P@G_2 | Pb@H_0 Pb@H_1 Pb@H_2]
    GHbd = np.zeros((P2, GH_COLS), np.float32)               # (18, 54)
    GHbd[:NP_, :D * NP_] = Gcat
    GHbd[NP_:, D * NP_:] = Hcat
    # qvec @ QBHG = [q@H_0 q@H_1 q@H_2 | q@G_0 q@G_1 q@G_2]
    QBHG = QB @ np.concatenate([Hcat, Gcat], axis=1)         # (3, 54)
    # RR sums the 3 j-blocks; the P_back half carries the minus sign.
    RR = np.zeros((GH_COLS, P2), np.float32)                 # (54, 18)
    for j in range(D):
        for p in range(NP_):
            RR[j * NP_ + p, p] = 1.0
            RR[D * NP_ + j * NP_ + p, NP_ + p] = -1.0

    cpack = np.zeros((CPACK_ROWS, CPACK_COLS), np.float32)
    cpack[GHBD_ROW:GHBD_ROW + P2, :GH_COLS] = GHbd
    cpack[QBHG_ROW:QBHG_ROW + NH, :GH_COLS] = QBHG
    cpack[RR_ROW:RR_ROW + GH_COLS, :P2] = RR
    # latent passthrough + y-tail/y0/t/ones inertness rely on zero pad rows:
    assert np.all(cpack[GHBD_ROW + P2:QBHG_ROW] == 0.0)
    assert np.all(cpack[QBHG_ROW + NH:RR_ROW] == 0.0)
    return jnp.asarray(cpack)


CPACK = _build_cpack()


# --------------------------------- kernel ------------------------------------
def odefunc_kernel(x_ref, wpack_ref, cpack_ref, out_ref):
    f32 = jnp.float32
    x = x_ref[...]                                            # (TB, 32)

    # ---- MLP net(cat(y, y0, t)); b1 folded into W1 via the ones column ------
    h = jnp.tanh(jnp.dot(x, wpack_ref[W1_ROW:W1_ROW + X_COLS, :],
                         preferred_element_type=f32))
    h = jnp.tanh(jnp.dot(h, wpack_ref[W2_ROW:W2_ROW + HID, :],
                         preferred_element_type=f32)
                 + wpack_ref[B2_ROW:B2_ROW + 1, :])
    out = (jnp.dot(h, wpack_ref[W3_ROW:W3_ROW + HID, :],
                   preferred_element_type=f32)
           + wpack_ref[B3_ROW:B3_ROW + 1, :])                 # (TB, 32); cols 0..6 live

    # torch.nn.functional.softplus (incl. its beta*x > 20 threshold) on all
    # lanes; only the hazard columns are taken from `sp`, the rest pass through.
    bx = SOFTPLUS_BETA * out
    sp = jnp.where(bx > 20.0, out, jnp.log1p(jnp.exp(bx)) / SOFTPLUS_BETA)
    is_hazard = lax.broadcasted_iota(jnp.int32, out.shape, 1) < NH
    tail = jnp.where(is_hazard, sp, out)                      # [qvec | dlatent | ...]

    # ---- P' = P q  and  P'_back = -q P_back via 3 folded constant matmuls ---
    # (zero pad rows in cpack make the non-[P|Pb] columns of x and the
    #  non-hazard columns of sp algebraically inert)
    a1 = jnp.dot(x, cpack_ref[GHBD_ROW:GHBD_ROW + 32, :],
                 preferred_element_type=f32)                  # (TB, 64)
    a2 = jnp.dot(sp, cpack_ref[QBHG_ROW:QBHG_ROW + 32, :],
                 preferred_element_type=f32)                  # (TB, 64)
    pp = jnp.dot(a1 * a2, cpack_ref[RR_ROW:RR_ROW + 64, :],
                 preferred_element_type=f32)                  # (TB, 64); cols 0..17 live

    # two direct slice stores (no in-kernel lane concat)
    out_ref[:, :P2] = pp[:, :P2]
    out_ref[:, P2:] = tail[:, :OUT_MLP]


# -------------------------------- wrapper ------------------------------------
def prepare_params(params):
    """One-time packing of the MLP parameters (hoist out of any solver loop)."""
    w1, b1, w2, b2, w3, b3 = params
    wpack = jnp.zeros((WPACK_ROWS, HID), jnp.float32)
    wpack = wpack.at[W1_ROW:W1_ROW + IN_DIM, :].set(w1)       # rows 0..29
    wpack = wpack.at[W1_ROW + IN_DIM, :].set(b1)              # row 30 (ones column)
    wpack = wpack.at[W2_ROW:W2_ROW + HID, :].set(w2)
    wpack = wpack.at[W3_ROW:W3_ROW + HID, :OUT_MLP].set(w3)
    wpack = wpack.at[B2_ROW, :].set(b2)
    wpack = wpack.at[B3_ROW, :OUT_MLP].set(b3)
    return wpack, CPACK


def odefunc_forward(t, y, y0, packed, *, max_block_batch=128):
    wpack, cpack = packed
    B = y.shape[0]
    # lane-dense MLP input slab [y | y0 | t | 1 | 0-pad] (bias column folded)
    x = jnp.concatenate(
        [y.astype(jnp.float32), y0.astype(jnp.float32),
         jnp.full((B, 1), t, jnp.float32),
         jnp.ones((B, 1), jnp.float32),
         jnp.zeros((B, X_COLS - (IN_DIM + 1)), jnp.float32)], axis=1)

    tb = B if B <= max_block_batch else max_block_batch
    pad = (-B) % tb
    if pad:
        x = jnp.pad(x, ((0, pad), (0, 0)))
    nb = (B + pad) // tb

    # TODO(synk): in a full SurvNODE solver, fuse the RK stages / time steps into
    # one pallas_call (extra "arbitrary" grid axis, y-state kept in VMEM scratch)
    # so the packed weights are DMA'd once per solve instead of once per call.
    out = pl.pallas_call(
        odefunc_kernel,
        out_shape=jax.ShapeDtypeStruct((B + pad, Y_DIM), jnp.float32),
        grid=(nb,),
        in_specs=[
            pl.BlockSpec((tb, X_COLS), lambda i: (i, 0)),
            pl.BlockSpec((WPACK_ROWS, HID), lambda i: (0, 0)),        # VMEM-resident
            pl.BlockSpec((CPACK_ROWS, CPACK_COLS), lambda i: (0, 0)),  # VMEM-resident
        ],
        out_specs=pl.BlockSpec((tb, Y_DIM), lambda i: (i, 0)),
        compiler_params=pltpu.CompilerParams(
            dimension_semantics=("parallel",)),
    )(x, wpack, cpack)
    return out[:B] if pad else out


# --------------------------- pure-JAX reference -------------------------------
def ref_forward(t, y, y0, params):
    w1, b1, w2, b2, w3, b3 = params
    B = y.shape[0]
    x = jnp.concatenate([y, y0, jnp.full((B, 1), t, jnp.float32)], axis=1)
    h = jnp.tanh(x @ w1 + b1)
    h = jnp.tanh(h @ w2 + b2)
    out = h @ w3 + b3
    hz = out[:, :NH]
    bx = SOFTPLUS_BETA * hz
    qvec = jnp.where(bx > 20.0, hz, jnp.log1p(jnp.exp(bx)) / SOFTPLUS_BETA)
    rows, cols = np.nonzero(TRANS == 1.0)
    q = jnp.zeros((B, D, D), jnp.float32)
    q = q.at[:, rows, cols].set(qvec)
    q = q.at[:, np.arange(D), np.arange(D)].set(-q.sum(2))
    P = y[:, :NP_].reshape(B, D, D)
    Pb = y[:, NP_:2 * NP_].reshape(B, D, D)
    Pp = jnp.einsum('bij,bjk->bik', P, q)
    Ppb = -jnp.einsum('bij,bjk->bik', q, Pb)
    return jnp.concatenate(
        [Pp.reshape(B, -1), Ppb.reshape(B, -1), qvec, out[:, NH:]], axis=1)


if __name__ == "__main__":
    key = jax.random.PRNGKey(0)
    k = jax.random.split(key, 5)
    # nn.init.normal_(weight, std=0.1), bias = 0  (weights stored as (in, out))
    w1 = 0.1 * jax.random.normal(k[0], (IN_DIM, LAYERS[0]), jnp.float32)
    b1 = jnp.zeros((LAYERS[0],), jnp.float32)
    w2 = 0.1 * jax.random.normal(k[1], (LAYERS[0], LAYERS[1]), jnp.float32)
    b2 = jnp.zeros((LAYERS[1],), jnp.float32)
    w3 = 0.1 * jax.random.normal(k[2], (LAYERS[1], OUT_MLP), jnp.float32)
    b3 = jnp.zeros((OUT_MLP,), jnp.float32)
    params = (w1, b1, w2, b2, w3, b3)
    packed = prepare_params(params)

    y = jax.random.normal(k[3], (BATCH, Y_DIM), jnp.float32)
    y0 = jax.random.normal(k[4], (BATCH, NUM_LATENT), jnp.float32)
    t = 0.37

    fwd = jax.jit(odefunc_forward)
    out = jax.block_until_ready(fwd(t, y, y0, packed))

    ref = ref_forward(t, y, y0, params)
    assert out.shape == (BATCH, Y_DIM)
    np.testing.assert_allclose(np.asarray(out), np.asarray(ref), rtol=1e-4, atol=1e-5)
    print("KERNEL_OK")
</pallas_src>

<mosaic_0001>
module attributes {stable_mosaic.version = 11 : i64} {
  func.func @odefunc_kernel(%arg0: i32, %arg1: memref<8x32xf32, #tpu.memory_space<vmem>>, %arg2: memref<112x32xf32, #tpu.memory_space<vmem>>, %arg3: memref<128x64xf32, #tpu.memory_space<vmem>>, %arg4: memref<8x25xf32, #tpu.memory_space<vmem>>) attributes {dimension_semantics = [#tpu.dimension_semantics<parallel>], iteration_bounds = array<i64: 1>, scalar_prefetch = 0 : i64, scratch_operands = 0 : i64, tpu.core_type = #tpu.core_type<tc>, window_params = [{transform_indices = @transform_0, window_bounds = array<i64: 8, 32>}, {pipeline_mode = #tpu.pipeline_mode<synchronous>, transform_indices = @transform_1, window_bounds = array<i64: 112, 32>}, {pipeline_mode = #tpu.pipeline_mode<synchronous>, transform_indices = @transform_2, window_bounds = array<i64: 128, 64>}, {transform_indices = @transform_3, window_bounds = array<i64: 8, 25>}]} {
    %c0 = arith.constant 0 : index
    %c0_0 = arith.constant 0 : index
    %0 = vector.load %arg1[%c0, %c0_0] : memref<8x32xf32, #tpu.memory_space<vmem>>, vector<8x32xf32>
    %c0_1 = arith.constant 0 : index
    %c0_2 = arith.constant 0 : index
    %1 = vector.load %arg2[%c0_1, %c0_2] : memref<112x32xf32, #tpu.memory_space<vmem>>, vector<32x32xf32>
    %cst = arith.constant dense<0.000000e+00> : vector<8x32xf32>
    %2 = tpu.matmul %0, %1, %cst {dimension_numbers = #tpu.dot_dimension_numbers<[1], [0], [0], [1], [0, 0, 1, 1], [], []>} : vector<8x32xf32>, vector<32x32xf32>, vector<8x32xf32> -> vector<8x32xf32>
    %3 = math.tanh %2 : vector<8x32xf32>
    %c32 = arith.constant 32 : index
    %c0_3 = arith.constant 0 : index
    %4 = vector.load %arg2[%c32, %c0_3] : memref<112x32xf32, #tpu.memory_space<vmem>>, vector<32x32xf32>
    %cst_4 = arith.constant dense<0.000000e+00> : vector<8x32xf32>
    %5 = tpu.matmul %3, %4, %cst_4 {dimension_numbers = #tpu.dot_dimension_numbers<[1], [0], [0], [1], [0, 0, 1, 1], [], []>} : vector<8x32xf32>, vector<32x32xf32>, vector<8x32xf32> -> vector<8x32xf32>
    %c96 = arith.constant 96 : index
    %c0_5 = arith.constant 0 : index
    %6 = vector.load %arg2[%c96, %c0_5] : memref<112x32xf32, #tpu.memory_space<vmem>>, vector<1x32xf32>
    %7 = vector.broadcast %6 : vector<1x32xf32> to vector<8x32xf32>
    %8 = arith.addf %5, %7 : vector<8x32xf32>
    %9 = math.tanh %8 : vector<8x32xf32>
    %c64 = arith.constant 64 : index
    %c0_6 = arith.constant 0 : index
    %10 = vector.load %arg2[%c64, %c0_6] : memref<112x32xf32, #tpu.memory_space<vmem>>, vector<32x32xf32>
    %cst_7 = arith.constant dense<0.000000e+00> : vector<8x32xf32>
    %11 = tpu.matmul %9, %10, %cst_7 {dimension_numbers = #tpu.dot_dimension_numbers<[1], [0], [0], [1], [0, 0, 1, 1], [], []>} : vector<8x32xf32>, vector<32x32xf32>, vector<8x32xf32> -> vector<8x32xf32>
    %c104 = arith.constant 104 : index
    %c0_8 = arith.constant 0 : index
    %12 = vector.load %arg2[%c104, %c0_8] : memref<112x32xf32, #tpu.memory_space<vmem>>, vector<1x32xf32>
    %13 = vector.broadcast %12 : vector<1x32xf32> to vector<8x32xf32>
    %14 = arith.addf %11, %13 : vector<8x32xf32>
    %cst_9 = arith.constant 1.000000e+00 : f32
    %15 = vector.broadcast %cst_9 : f32 to vector<8x32xf32>
    %16 = arith.mulf %15, %14 : vector<8x32xf32>
    %cst_10 = arith.constant 2.000000e+01 : f32
    %17 = vector.broadcast %cst_10 : f32 to vector<8x32xf32>
    %18 = arith.cmpf ogt, %16, %17 : vector<8x32xf32>
    %19 = math.exp %16 : vector<8x32xf32>
    %20 = math.log1p %19 : vector<8x32xf32>
    %cst_11 = arith.constant 1.000000e+00 : f32
    %21 = vector.broadcast %cst_11 : f32 to vector<8x32xf32>
    %22 = arith.divf %20, %21 : vector<8x32xf32>
    %23 = arith.select %18, %14, %22 : vector<8x32xi1>, vector<8x32xf32>
    %24 = tpu.iota {dimensions = array<i32: 1>} : vector<8x32xi32>
    %c3_i32 = arith.constant 3 : i32
    %25 = vector.broadcast %c3_i32 : i32 to vector<8x32xi32>
    %26 = arith.cmpi slt, %24, %25 : vector<8x32xi32>
    %27 = arith.select %26, %23, %14 : vector<8x32xi1>, vector<8x32xf32>
    %c0_12 = arith.constant 0 : index
    %c0_13 = arith.constant 0 : index
    %28 = vector.load %arg3[%c0_12, %c0_13] : memref<128x64xf32, #tpu.memory_space<vmem>>, vector<32x64xf32>
    %cst_14 = arith.constant dense<0.000000e+00> : vector<8x64xf32>
    %29 = tpu.matmul %0, %28, %cst_14 {dimension_numbers = #tpu.dot_dimension_numbers<[1], [0], [0], [1], [0, 0, 1, 1], [], []>} : vector<8x32xf32>, vector<32x64xf32>, vector<8x64xf32> -> vector<8x64xf32>
    %c32_15 = arith.constant 32 : index
    %c0_16 = arith.constant 0 : index
    %30 = vector.load %arg3[%c32_15, %c0_16] : memref<128x64xf32, #tpu.memory_space<vmem>>, vector<32x64xf32>
    %cst_17 = arith.constant dense<0.000000e+00> : vector<8x64xf32>
    %31 = tpu.matmul %23, %30, %cst_17 {dimension_numbers = #tpu.dot_dimension_numbers<[1], [0], [0], [1], [0, 0, 1, 1], [], []>} : vector<8x32xf32>, vector<32x64xf32>, vector<8x64xf32> -> vector<8x64xf32>
    %32 = arith.mulf %29, %31 : vector<8x64xf32>
    %c64_18 = arith.constant 64 : index
    %c0_19 = arith.constant 0 : index
    %33 = vector.load %arg3[%c64_18, %c0_19] : memref<128x64xf32, #tpu.memory_space<vmem>>, vector<64x64xf32>
    %cst_20 = arith.constant dense<0.000000e+00> : vector<8x64xf32>
    %34 = tpu.matmul %32, %33, %cst_20 {dimension_numbers = #tpu.dot_dimension_numbers<[1], [0], [0], [1], [0, 0, 1, 1], [], []>} : vector<8x64xf32>, vector<64x64xf32>, vector<8x64xf32> -> vector<8x64xf32>
    %35 = vector.extract_strided_slice %34 {offsets = [0, 0], sizes = [8, 18], strides = [1, 1]} : vector<8x64xf32> to vector<8x18xf32>
    %c0_21 = arith.constant 0 : index
    %c0_22 = arith.constant 0 : index
    %36 = vector.load %arg4[%c0_21, %c0_22] : memref<8x25xf32, #tpu.memory_space<vmem>>, vector<8x18xf32>
    tpu.vector_store %arg4[%c0_21, %c0_22], %35 {strides = array<i32>} : memref<8x25xf32, #tpu.memory_space<vmem>>, vector<8x18xf32>,
    %37 = vector.extract_strided_slice %27 {offsets = [0, 0], sizes = [8, 7], strides = [1, 1]} : vector<8x32xf32> to vector<8x7xf32>
    %c0_23 = arith.constant 0 : index
    %c18 = arith.constant 18 : index
    %38 = vector.load %arg4[%c0_23, %c18] : memref<8x25xf32, #tpu.memory_space<vmem>>, vector<8x7xf32>
    tpu.vector_store %arg4[%c0_23, %c18], %37 {strides = array<i32>} : memref<8x25xf32, #tpu.memory_space<vmem>>, vector<8x7xf32>,
    return
  }
  func.func @transform_0(%arg0: i32) -> (i32, i32) {
    %c0_i32 = arith.constant 0 : i32
    %c0_i32_0 = arith.constant 0 : i32
    return %arg0, %c0_i32 : i32, i32
  }
  func.func @transform_1(%arg0: i32) -> (i32, i32) {
    %c0_i32 = arith.constant 0 : i32
    %c0_i32_0 = arith.constant 0 : i32
    %c0_i32_1 = arith.constant 0 : i32
    return %c0_i32, %c0_i32_0 : i32, i32
  }
  func.func @transform_2(%arg0: i32) -> (i32, i32) {
    %c0_i32 = arith.constant 0 : i32
    %c0_i32_0 = arith.constant 0 : i32
    %c0_i32_1 = arith.constant 0 : i32
    return %c0_i32, %c0_i32_0 : i32, i32
  }
  func.func @transform_3(%arg0: i32) -> (i32, i32) {
    %c0_i32 = arith.constant 0 : i32
    %c0_i32_0 = arith.constant 0 : i32
    return %arg0, %c0_i32 : i32, i32
  }
}

</mosaic_0001>

<bundles_post_ra>
// kernel: odefunc_forward.1
= control target key start
LH: loop header
LB: loop body
LE: loop exit
PB: predicated region body
PF: predicated region fallthrough
CT: control target
= control target key end

     0   :  { %v683_v1 = vmov 0.0   ;;  %vm684_vm0 = vmmov 0   ;;  %s852_s0 = inlined_call_operand.vmem [shape: f32[8,32], index: 0, kind: input, shape index: {}]   ;;  %s853_s1 = inlined_call_operand.vmem [shape: f32[112,32], index: 1, kind: input, shape index: {}]   ;;  %s854_s2 = inlined_call_operand.vmem [shape: f32[128,64], index: 2, kind: input, shape index: {}]   ;;  %s855_s3 = inlined_call_operand.hbm [shape: f32[8,25], index: 3, kind: output, shape index: {}]  }
   0x1   :  { %v19_v0 = vld [vmem:[%s853_s1 + $0x18] sm:$0xff]  ;;  %575 = vmatprep.subr.mxu0 %v683_v1  ;;  %v18_v2 = vld [vmem:[%s853_s1 + $0x10] sm:$0xff]  ;;  %583 = vmatprep.mubr.msk.f32.mxu0 %vm684_vm0, %v683_v1 }
   0x2   :  { %8 = vsyncpa [#allocation3], 0  ;;  %576 = vmatpush3.msra.mxu0 %v19_v0  ;;  %586 = vmatprep.subr.mxu1 %v683_v1  ;;  %v17_v3 = vld [vmem:[%s853_s1 + $0x8] sm:$0xff]  ;;  %v16_v4 = vld [vmem:[%s853_s1] sm:$0xff]  ;;  %vm20_vm1 = vcmask 261120   ;;  %v273_v40 = vlaneseq  ;;  %s685_s13 = smov 18  }
   0x3   :  { %577 = vmatprep.subr.mxu0 %v683_v1  ;;  %594 = vmatprep.mubr.msk.f32.mxu1 %vm684_vm0, %v683_v1  ;;  %v730_v5 = vld [vmem:[%s852_s0] sm:$0xff]  ;;  %v98_v6 = vld [vmem:[%s853_s1 + $0x38] sm:$0xff]  ;;  %v97_v7 = vld [vmem:[%s853_s1 + $0x30] sm:$0xff]  ;;  %vm437_vm5 = vcmask 523264   ;;  %s686_s18 = smov [#allocation2]   ;;  %vm511_vm6 = vcmask 146432  }
   0x4   :  { %578 = vmatpush3.msra.mxu0 %v18_v2  ;;  %587 = vmatpush3.msra.mxu1 %v98_v6  ;;  %v96_v8 = vld [vmem:[%s853_s1 + $0x28] sm:$0xff]  ;;  %v95_v9 = vld [vmem:[%s853_s1 + $0x20] sm:$0xff]  ;;  %v181_v13 = vld [vmem:[%s853_s1 + $0x58] sm:$0xff]  ;;  %v274_v45 = vand.u32 127, %v273_v40  ;;  %s525_s19 = sshll.u32 %s686_s18, 4  ;;  %vm517_vm7 = vcmask 203920   ;;  %s526_s19 = int_to_ptr.vmem [resolvable:$true] %s525_s19 }
   0x5   :  { %579 = vmatprep.subr.mxu0 %v683_v1  ;;  %588 = vmatprep.subr.mxu1 %v683_v1  ;;  %v180_v14 = vld [vmem:[%s853_s1 + $0x50] sm:$0xff]  ;;  %v179_v15 = vld [vmem:[%s853_s1 + $0x48] sm:$0xff]  ;;  %v178_v16 = vld [vmem:[%s853_s1 + $0x40] sm:$0xff]  ;;  %s661_s20 = scalar_lea.vmem %s526_s19, 128  ;;  %p666_p1 = scmp.lt.s32.totalorder %s526_s19, %s526_s19 }
   0x6   :  { %580 = vmatpush3.msra.mxu0 %v17_v3  ;;  %589 = vmatpush3.msra.mxu1 %v97_v7  ;;  %v534_v17 = vld [vmem:[%s853_s1 + $0x60] ss:$0 sm:$0xff]  ;;  %v280_v22 = vld [vmem:[%s854_s2 + $0x18] sm:$0xff]  ;;  %v279_v23 = vld [vmem:[%s854_s2 + $0x10] sm:$0xff]  ;;  %vm275_vm3 = vcmp.lt.s32.totalorder %v274_v45, 3  ;;  %p662_p0 = scmp.ne.s32.totalorder %s526_s19, %s661_s20  ;;  %p667_p2 = scmp.lt.s32.totalorder %s661_s20, %s661_s20 }
   0x7   :  { %581 = vmatprep.subr.mxu0 %v683_v1  ;;  %590 = vmatprep.subr.mxu1 %v683_v1  ;;  %v354_v24 = vld [vmem:[%s854_s2 + $0x38] sm:$0xff]  ;;  %v353_v25 = vld [vmem:[%s854_s2 + $0x30] sm:$0xff]  ;;  %v278_v26 = vld [vmem:[%s854_s2 + $0x8] sm:$0xff] }
   0x8   :  { %582 = vmatpush3.msra.mxu0 %v16_v4  ;;  %591 = vmatpush3.msra.mxu1 %v96_v8  ;;  %v352_v27 = vld [vmem:[%s854_s2 + $0x28] sm:$0xff]  ;;  %v277_v28 = vld [vmem:[%s854_s2] sm:$0xff]  ;;  %v436_v37 = vld [vmem:[%s854_s2 + $0x78] sm:$0xff]  ;;  %p668_p3 = por %p667_p2, %p666_p1 }
   0x9   :  { %584 = vmatmul.mubr.msk.f32.vlgmr.msra.gmra.mxu0 %vm20_vm1, %v730_v5  ;;  %597 = vmatprep.subr.mxu0 %v683_v1  ;;  %v351_v29 = vld [vmem:[%s854_s2 + $0x20] sm:$0xff]  ;;  %v536_v30 = vld [vmem:[%s853_s1 + $0x68] ss:$0 sm:$0xff]  ;;  %v435_v38 = vld [vmem:[%s854_s2 + $0x70] sm:$0xff] }
   0xa   :  { %605 = vmatprep.mubr.msk.f32.mxu0 %vm684_vm0, %v683_v1  ;;  %592 = vmatprep.subr.mxu1 %v683_v1  ;;  %v434_v41 = vld [vmem:[%s854_s2 + $0x68] sm:$0xff]  ;;  %v433_v42 = vld [vmem:[%s854_s2 + $0x60] sm:$0xff]  ;;  %v432_v46 = vld [vmem:[%s854_s2 + $0x58] sm:$0xff]  ;;  %p669_p4 = pnand %p668_p3, %p662_p0 }
   0xb   :  { %593 = vmatpush3.msra.mxu1 %v95_v9  ;;  %598 = vmatpush3.msra.mxu0 %v181_v13  ;;  %v431_v48 = vld [vmem:[%s854_s2 + $0x50] sm:$0xff]  ;;  %v430_v56 = vld [vmem:[%s854_s2 + $0x48] sm:$0xff]  ;;  %v429_v57 = vld [vmem:[%s854_s2 + $0x40] sm:$0xff] }
   0xc   :  { %608 = vmatprep.subr.mxu1 %v683_v1  ;;  %599 = vmatprep.subr.mxu0 %v683_v1 }
   0xd   :  { %600 = vmatpush3.msra.mxu0 %v180_v14 }
   0xe   :  { %601 = vmatprep.subr.mxu0 %v683_v1 }
   0xf   :  { %602 = vmatpush3.msra.mxu0 %v179_v15 }
  0x10   :  { %603 = vmatprep.subr.mxu0 %v683_v1 }
  0x11   :  { %604 = vmatpush3.msra.mxu0 %v178_v16 }
  0x12   :  { %619 = vmatprep.subr.mxu0 %v683_v1 }
  0xc9   :  { %v90_v10 = vpop.f32.mrf.mxu0 }
  0xca   :  { %653 = vtanh.f32 %v90_v10 }
  0xcb   :  { %v585_v11 = vpop.f32.mrf.mxu0 }
  0xd7   :  { %v654_v12 = vpop.eup %653 }
  0xd8   :  { %595 = vmatmul.mubr.msk.f32.vlgmr.msra.gmra.mxu1 %vm20_vm1, %v654_v12 }
  0xd9   :  { %616 = vmatprep.mubr.msk.f32.mxu1 %vm684_vm0, %v683_v1  ;;  %609 = vmatpush3.msra.mxu1 %v280_v22 }
  0xda   :  { %610 = vmatprep.subr.mxu1 %v683_v1 }
  0xdb   :  { %611 = vmatpush3.msra.mxu1 %v279_v23 }
  0xdc   :  { %612 = vmatprep.subr.mxu1 %v683_v1 }
  0xdd   :  { %613 = vmatpush3.msra.mxu1 %v278_v26 }
  0xde   :  { %614 = vmatprep.subr.mxu1 %v683_v1 }
  0xdf   :  { %615 = vmatpush3.msra.mxu1 %v277_v28 }
  0xe0   :  { %617 = vmatmul.mubr.msk.f32.vlgmr.msra.gmra.mxu1 %vm20_vm1, %v730_v5  ;;  %630 = vmatprep.subr.mxu1 %v683_v1 }
  0xe1   :  { %646 = vmatprep.mubr.msk.f32.mxu1 %vm684_vm0, %v683_v1  ;;  %631 = vmatpush3.msra.mxu1 %v436_v37 }
  0xe2   :  { %632 = vmatprep.subr.mxu1 %v683_v1 }
  0xe3   :  { %633 = vmatpush3.msra.mxu1 %v435_v38 }
  0xe4   :  { %634 = vmatprep.subr.mxu1 %v683_v1 }
  0xe5   :  { %635 = vmatpush3.msra.mxu1 %v434_v41 }
  0xe6   :  { %636 = vmatprep.subr.mxu1 %v683_v1 }
  0xe7   :  { %637 = vmatpush3.msra.mxu1 %v433_v42 }
  0xe8   :  { %638 = vmatprep.subr.mxu1 %v683_v1 }
  0xe9   :  { %639 = vmatpush3.msra.mxu1 %v432_v46 }
  0xea   :  { %640 = vmatprep.subr.mxu1 %v683_v1 }
  0xeb   :  { %641 = vmatpush3.msra.mxu1 %v431_v48 }
  0xec   :  { %642 = vmatprep.subr.mxu1 %v683_v1 }
  0xed   :  { %643 = vmatpush3.msra.mxu1 %v430_v56 }
  0xee   :  { %644 = vmatprep.subr.mxu1 %v683_v1 }
  0xef   :  { %645 = vmatpush3.msra.mxu1 %v429_v57 }
 0x198   :  { %v173_v18 = vpop.f32.mrf.mxu1 }
 0x199   :  { %v174_v19 = vadd.f32 %v534_v17, %v173_v18 }
 0x19a   :  { %v596_v20 = vpop.f32.mrf.mxu1 }
 0x19b   :  { %655 = vtanh.f32 %v174_v19 }
 0x1a0   :  { %v347_v54 = vpop.f32.mrf.mxu1 }
 0x1a2   :  { %v618_v55 = vpop.f32.mrf.mxu1 }
 0x1a8   :  { %v656_v21 = vpop.eup %655 }
 0x1a9   :  { %606 = vmatmul.mubr.msk.f32.vlgmr.msra.gmra.mxu0 %vm20_vm1, %v656_v21 }
 0x1aa   :  { %627 = vmatprep.mubr.msk.f32.mxu0 %vm684_vm0, %v683_v1  ;;  %620 = vmatpush3.msra.mxu0 %v354_v24 }
 0x1ab   :  { %621 = vmatprep.subr.mxu0 %v683_v1 }
 0x1ac   :  { %622 = vmatpush3.msra.mxu0 %v353_v25 }
 0x1ad   :  { %623 = vmatprep.subr.mxu0 %v683_v1 }
 0x1ae   :  { %624 = vmatpush3.msra.mxu0 %v352_v27 }
 0x1af   :  { %625 = vmatprep.subr.mxu0 %v683_v1 }
 0x1b0   :  { %626 = vmatpush3.msra.mxu0 %v351_v29 }
 0x269   :  { %v256_v31 = vpop.f32.mrf.mxu0 }
 0x26a   :  { %v257_v32 = vadd.f32 %v536_v30, %v256_v31 }
 0x26b   :  { %v607_v33 = vpop.f32.mrf.mxu0 }
 0x26c   :  { %v261_v34 = vmul.f32 1.442695, %v257_v32  ;;  %vm260_vm4 = vcmp.gt.f32.partialorder %v257_v32, 20.0 }
 0x26e   :  { %657 = vpow2.f32 %v261_v34 }
 0x27b   :  { %v658_v35 = vpop.eup %657 }
 0x27c   :  { %v263_v36 = vadd.f32 1.0, %v658_v35  ;;  %v266_v39 = vmul.f32 -0.5, %v658_v35  ;;  %v269_v44 = vand.u32 2147483647, %v658_v35 }
 0x27e   :  { %659 = vlog2.f32 %v263_v36  ;;  %v267_v43 = vadd.f32 1.0, %v266_v39  ;;  %vm270_vm2 = vcmp.lt.f32.partialorder %v269_v44, 0.0004427343 }
 0x280   :  { %v268_v50 = vmul.f32 %v658_v35, %v267_v43 }
 0x28b   :  { %v660_v47 = vpop.eup %659 }
 0x28c   :  { %v265_v49 = vmul.f32 0.6931472, %v660_v47 }
 0x28e   :  { %v271_v51 = vsel %vm270_vm2, %v268_v50, %v265_v49 }
 0x28f   :  { %v272_v52 = vsel %vm260_vm4, %v257_v32, %v271_v51 }
 0x290   :  { %628 = vmatmul.mubr.msk.f32.vlgmr.msra.gmra.mxu0 %vm20_vm1, %v272_v52  ;;  %v276_v53 = vsel %vm275_vm3, %v272_v52, %v257_v32 }
 0x291   :  { %514 = vrot.lane.b32.xlu0 %v276_v53, %s685_s13 }
 0x303   :  { %v515_v62 = vpop.permute.xlu0 %514 }
 0x350   :  { %v424_v58 = vpop.f32.mrf.mxu0 }
 0x351   :  { %v428_v59 = vmul.f32 %v424_v58, %v347_v54 }
 0x352   :  { %v629_v60 = vpop.f32.mrf.mxu0 }
 0x353   :  { %647 = vmatmul.mubr.msk.f32.vlgmr.msra.gmra.mxu1 %vm437_vm5, %v428_v59 }
 0x413   :  { %v507_v61 = vpop.f32.mrf.mxu1 }
 0x414   :  { %512 = vst.msk [vmem:[#allocation2] sm:$0xff] %vm511_vm6, %v507_v61 }
 0x415   :  { %v648_v63 = vpop.f32.mrf.mxu1  ;;  %518 = vst.msk [vmem:[#allocation2] sm:$0xff] %vm517_vm7, %v515_v62 }
 0x416   :  { %672 = shalt.err (!%p669_p4)
}
 0x417   :  { %528 = dma.vmem_to_hbm [thread:$0]  %s526_s19, 128, %s855_s3, [#allocation3]  }
 0x418   :  { %681 = dma.done.wait [#allocation3], 128  }
 0x419   :  { %682 = vsyncadd [#allocation3], 4294967168 }
 0x41a   :  { %532 = vsyncpa [#allocation3], 1 }

</bundles_post_ra>
